<compile_context>
chip_gen: v7x
topology: tpu7x:2x2x1
jax: 0.10.0
libtpu: 0.0.40
codegen_flags: <defaults>
</compile_context>

<pallas_src>
import functools

import jax
import jax.numpy as jnp
from jax.experimental import pallas as pl
from jax.experimental.pallas import tpu as pltpu

LANES = 128
SUBLANES = 8
STRIP_ROWS = 256        # rows per compute strip (bounds vreg live ranges)
MAX_BLOCK_ROWS = 1024   # (1024, 128) f32 = 512 KiB per input per block


def _focal_elements_f32(x, y, alpha, gamma, w0, w1):
    """Elementwise weighted focal loss in plain JAX (residue + reference)."""
    w = jnp.where(y > 0.0, jnp.float32(w1), jnp.float32(w0))
    bce = w * (jnp.maximum(x, 0.0) - x * y + jnp.log1p(jnp.exp(-jnp.abs(x))))
    pt = jnp.exp(-bce)
    return jnp.float32(alpha) * (1.0 - pt) ** jnp.float32(gamma) * bce


def _pow_gamma(omp, gamma):
    """(1 - pt) ** gamma; multiply chain for small non-negative integer gamma."""
    gf = float(gamma)
    if gf == int(gf) and 0 <= int(gf) <= 8:
        gi = int(gf)
        if gi == 0:
            return jnp.ones_like(omp)
        mod = omp
        for _ in range(gi - 1):
            mod = mod * omp
        return mod
    return omp ** jnp.float32(gamma)


def _focal_partial_kernel(x_ref, y_ref, out_ref, *,
                          alpha, gamma, w0, w1,
                          blocks_per_core, block_rows, strip_rows, num_strips,
                          rows_total, need_mask):
    c = pl.program_id(0)   # core (parallel) axis
    i = pl.program_id(1)   # block-within-core (arbitrary, accumulating) axis

    @pl.when(i == 0)
    def _():
        out_ref[...] = jnp.zeros_like(out_ref)

    # Flat block id may exceed the real block count for the "dead" block a core
    # gets when total_blocks is odd; those rows are fully masked below (the
    # index_map clamps the DMA to a valid block).
    base_row = (c * blocks_per_core + i) * block_rows

    def contrib(x_raw, y_raw, row_off):
        x = x_raw.astype(jnp.float32)
        y = y_raw.astype(jnp.float32)
        # weight = w0 everywhere, w1 where target > 0.
        w = jnp.where(y > 0.0, jnp.float32(w1), jnp.float32(w0))
        # Numerically-stable BCE-with-logits (matches torch BCEWithLogitsLoss).
        # log(1 + z) with z = exp(-|x|) <= 1: naive form loses accuracy only
        # where the term itself is negligible.
        bce = w * (jnp.maximum(x, 0.0) - x * y
                   + jnp.log(1.0 + jnp.exp(-jnp.abs(x))))
        pt = jnp.exp(-bce)
        f = jnp.float32(alpha) * _pow_gamma(1.0 - pt, gamma) * bce
        if need_mask:
            rows_left = rows_total - base_row - row_off        # traced scalar
            row_ids = jax.lax.broadcasted_iota(jnp.int32, f.shape, 0)
            f = jnp.where(row_ids < rows_left, f, 0.0)
        # Fold (strip_rows, 128) -> one (8, 128) vreg: sublane-aligned VPU adds.
        return f.reshape(-1, SUBLANES, LANES).sum(axis=0)

    if num_strips == 1:
        part = contrib(x_ref[...], y_ref[...], 0)
    else:
        def body(s, acc):
            r0 = pl.multiple_of(s * strip_rows, strip_rows)
            return acc + contrib(x_ref[pl.ds(r0, strip_rows), :],
                                 y_ref[pl.ds(r0, strip_rows), :],
                                 s * strip_rows)
        part = jax.lax.fori_loop(0, num_strips, body,
                                 jnp.zeros((SUBLANES, LANES), jnp.float32))

    out_ref[...] += part[None]


def binary_focal_loss1(inputs, targets, *, alpha=1.0, gamma=2.0,
                       size_average=True, w0=1.0, w1=1.0):
    """Pallas-TPU equivalent of BinaryFocalLoss1.forward (BCE-with-logits path)."""
    if w0 is None or w1 is None:
        raise ValueError('w must be a number')
    assert inputs.shape == targets.shape
    total_n = int(inputs.size)

    x_flat = inputs.reshape(-1)
    y_flat = targets.reshape(-1)

    rows = total_n // LANES          # full 128-lane rows covered by the kernel
    main_n = rows * LANES

    if rows >= SUBLANES:
        # --- block / grid sizing (trace-time Python ints) --------------------
        if rows >= STRIP_ROWS:
            block_rows = min(MAX_BLOCK_ROWS, (rows // STRIP_ROWS) * STRIP_ROWS)
        else:
            block_rows = (rows // SUBLANES) * SUBLANES
        num_strips = max(1, block_rows // STRIP_ROWS)
        strip_rows = block_rows // num_strips

        total_blocks = pl.cdiv(rows, block_rows)
        num_cores = 2 if total_blocks >= 2 else 1   # one partial per v7x TC
        blocks_per_core = pl.cdiv(total_blocks, num_cores)
        need_mask = (rows % block_rows != 0) or \
                    (num_cores * blocks_per_core != total_blocks)

        # Offset-0 slice + reshape of the lane-aligned prefix (no pad copy).
        x2 = x_flat[:main_n].reshape(rows, LANES)
        y2 = y_flat[:main_n].reshape(rows, LANES)

        if num_cores * blocks_per_core > total_blocks:
            # Clamp the trailing dead block to a valid index; its rows are
            # masked to zero inside the kernel.
            def in_index(c, i):
                return (jnp.minimum(c * blocks_per_core + i, total_blocks - 1), 0)
        else:
            def in_index(c, i):
                return (c * blocks_per_core + i, 0)

        kernel = functools.partial(
            _focal_partial_kernel,
            alpha=float(alpha), gamma=float(gamma),
            w0=float(w0), w1=float(w1),
            blocks_per_core=int(blocks_per_core), block_rows=int(block_rows),
            strip_rows=int(strip_rows), num_strips=int(num_strips),
            rows_total=int(rows), need_mask=bool(need_mask))

        blk = pl.BlockSpec((block_rows, LANES), in_index)
        partials = pl.pallas_call(
            kernel,
            out_shape=jax.ShapeDtypeStruct((num_cores, SUBLANES, LANES),
                                           jnp.float32),
            grid_spec=pltpu.PrefetchScalarGridSpec(
                num_scalar_prefetch=0,
                grid=(num_cores, blocks_per_core),
                in_specs=[blk, blk],
                out_specs=pl.BlockSpec((1, SUBLANES, LANES),
                                       lambda c, i: (c, 0, 0)),
            ),
            compiler_params=pltpu.CompilerParams(
                dimension_semantics=("parallel", "arbitrary")),
        )(x2, y2)
        main_sum = jnp.sum(partials, dtype=jnp.float32)
        covered = main_n
    else:
        # Tiny input (< 8 full lane-rows): not worth a kernel launch.
        main_sum = jnp.float32(0.0)
        covered = 0

    if covered < total_n:
        # Ragged flat residue (< 128 elements, or a tiny whole input): the cost
        # of this plain-JAX epilogue is negligible vs. the streamed prefix.
        xr = x_flat[covered:].astype(jnp.float32)
        yr = y_flat[covered:].astype(jnp.float32)
        total = main_sum + jnp.sum(_focal_elements_f32(xr, yr,
                                                       alpha, gamma, w0, w1))
    else:
        total = main_sum

    if size_average:
        total = total * jnp.float32(1.0 / total_n)   # trace-time reciprocal
    return total


def _reference(inputs, targets, *, alpha=1.0, gamma=2.0,
               size_average=True, w0=1.0, w1=1.0):
    f = _focal_elements_f32(inputs.astype(jnp.float32),
                            targets.astype(jnp.float32),
                            alpha, gamma, w0, w1)
    return jnp.mean(f) if size_average else jnp.sum(f)


if __name__ == "__main__":
    key = jax.random.PRNGKey(0)
    k1, k2 = jax.random.split(key)

    def check(shape, **kw):
        x = jax.random.normal(k1, shape, dtype=jnp.float32)
        y = (jax.random.uniform(k2, shape) > 0.5).astype(jnp.float32)
        got = jax.block_until_ready(binary_focal_loss1(x, y, **kw))
        want = _reference(x, y, **kw)
        assert jnp.allclose(got, want, rtol=5e-5, atol=1e-5), (shape, kw, got, want)

    # 1) Module-default sized example: batch=2, channels=4, 16x16 spatial.
    #    2048 elems -> single block, single core, no masking.
    check((2, 4, 16, 16), alpha=1.0, gamma=2.0, size_average=True, w0=1.0, w1=2.0)

    # 2) Ragged size: 9102 elems -> two parallel partials, partial last block
    #    (row mask) and a 14-element flat residue; sum reduction.
    check((2, 3, 37, 41), alpha=0.5, gamma=2.0, size_average=False, w0=1.0, w1=3.0)

    # 3) Larger: 294912 elems -> 1024-row blocks, 4 compute strips per block,
    #    3 real blocks on a 2x2 grid (one clamped dead block), gamma=3 chain.
    check((4, 4, 128, 144), alpha=0.25, gamma=3.0, size_average=True, w0=0.5, w1=2.0)

    print("KERNEL_OK")
</pallas_src>

<mosaic_0001>
module attributes {stable_mosaic.version = 11 : i64} {
  func.func @_focal_partial_kernel(%arg0: i32, %arg1: i32, %arg2: memref<16x128xf32, #tpu.memory_space<vmem>>, %arg3: memref<16x128xf32, #tpu.memory_space<vmem>>, %arg4: memref<1x8x128xf32, #tpu.memory_space<vmem>>) attributes {dimension_semantics = [#tpu.dimension_semantics<parallel>, #tpu.dimension_semantics<arbitrary>], iteration_bounds = array<i64: 1, 1>, scalar_prefetch = 0 : i64, scratch_operands = 0 : i64, tpu.core_type = #tpu.core_type<tc>, window_params = [{transform_indices = @transform_0, window_bounds = array<i64: 16, 128>}, {transform_indices = @transform_1, window_bounds = array<i64: 16, 128>}, {transform_indices = @transform_2, window_bounds = array<i64: 1, 8, 128>}]} {
    %c0_i32 = arith.constant 0 : i32
    %0 = arith.cmpi eq, %arg1, %c0_i32 : i32
    %1 = arith.extui %0 : i1 to i32
    %c0_i32_0 = arith.constant 0 : i32
    %2 = arith.cmpi ne, %1, %c0_i32_0 : i32
    scf.if %2 {
      %cst_19 = arith.constant 0.000000e+00 : f32
      %38 = vector.broadcast %cst_19 : f32 to vector<1x8x128xf32>
      %c0_20 = arith.constant 0 : index
      %c0_21 = arith.constant 0 : index
      %c0_22 = arith.constant 0 : index
      %39 = vector.load %arg4[%c0_20, %c0_21, %c0_22] : memref<1x8x128xf32, #tpu.memory_space<vmem>>, vector<1x8x128xf32>
      tpu.vector_store %arg4[%c0_20, %c0_21, %c0_22], %38 {strides = array<i32>} : memref<1x8x128xf32, #tpu.memory_space<vmem>>, vector<1x8x128xf32>,
    } else {
    }
    %c0 = arith.constant 0 : index
    %c0_1 = arith.constant 0 : index
    %3 = vector.load %arg2[%c0, %c0_1] : memref<16x128xf32, #tpu.memory_space<vmem>>, vector<16x128xf32>
    %c0_2 = arith.constant 0 : index
    %c0_3 = arith.constant 0 : index
    %4 = vector.load %arg3[%c0_2, %c0_3] : memref<16x128xf32, #tpu.memory_space<vmem>>, vector<16x128xf32>
    %cst = arith.constant 0.000000e+00 : f32
    %5 = vector.broadcast %cst : f32 to vector<16x128xf32>
    %6 = arith.cmpf ogt, %4, %5 : vector<16x128xf32>
    %cst_4 = arith.constant 2.000000e+00 : f32
    %cst_5 = arith.constant 1.000000e+00 : f32
    %7 = vector.broadcast %cst_4 : f32 to vector<16x128xf32>
    %8 = vector.broadcast %cst_5 : f32 to vector<16x128xf32>
    %9 = arith.select %6, %7, %8 : vector<16x128xi1>, vector<16x128xf32>
    %cst_6 = arith.constant 0.000000e+00 : f32
    %10 = vector.broadcast %cst_6 : f32 to vector<16x128xf32>
    %11 = arith.maximumf %3, %10 : vector<16x128xf32>
    %12 = arith.mulf %3, %4 : vector<16x128xf32>
    %13 = arith.subf %11, %12 : vector<16x128xf32>
    %14 = math.absf %3 : vector<16x128xf32>
    %cst_7 = arith.constant 0.000000e+00 : f32
    %15 = vector.broadcast %cst_7 : f32 to vector<16x128xf32>
    %16 = arith.subf %15, %14 : vector<16x128xf32>
    %17 = math.exp %16 : vector<16x128xf32>
    %cst_8 = arith.constant 1.000000e+00 : f32
    %18 = vector.broadcast %cst_8 : f32 to vector<16x128xf32>
    %19 = arith.addf %18, %17 : vector<16x128xf32>
    %20 = math.log %19 : vector<16x128xf32>
    %21 = arith.addf %13, %20 : vector<16x128xf32>
    %22 = arith.mulf %9, %21 : vector<16x128xf32>
    %cst_9 = arith.constant 0.000000e+00 : f32
    %23 = vector.broadcast %cst_9 : f32 to vector<16x128xf32>
    %24 = arith.subf %23, %22 : vector<16x128xf32>
    %25 = math.exp %24 : vector<16x128xf32>
    %cst_10 = arith.constant 1.000000e+00 : f32
    %26 = vector.broadcast %cst_10 : f32 to vector<16x128xf32>
    %27 = arith.subf %26, %25 : vector<16x128xf32>
    %28 = arith.mulf %27, %27 : vector<16x128xf32>
    %cst_11 = arith.constant 1.000000e+00 : f32
    %29 = vector.broadcast %cst_11 : f32 to vector<16x128xf32>
    %30 = arith.mulf %29, %28 : vector<16x128xf32>
    %31 = arith.mulf %30, %22 : vector<16x128xf32>
    %32 = vector.shape_cast %31 : vector<16x128xf32> to vector<2x8x128xf32>
    %cst_12 = arith.constant dense<0.000000e+00> : vector<8x128xf32>
    %33 = vector.multi_reduction <add>, %32, %cst_12 [0] : vector<2x8x128xf32> to vector<8x128xf32>
    %c0_13 = arith.constant 0 : index
    %c0_14 = arith.constant 0 : index
    %c0_15 = arith.constant 0 : index
    %34 = vector.load %arg4[%c0_13, %c0_14, %c0_15] : memref<1x8x128xf32, #tpu.memory_space<vmem>>, vector<1x8x128xf32>
    %35 = vector.shape_cast %33 : vector<8x128xf32> to vector<1x8x128xf32>
    %36 = arith.addf %34, %35 : vector<1x8x128xf32>
    %c0_16 = arith.constant 0 : index
    %c0_17 = arith.constant 0 : index
    %c0_18 = arith.constant 0 : index
    %37 = vector.load %arg4[%c0_16, %c0_17, %c0_18] : memref<1x8x128xf32, #tpu.memory_space<vmem>>, vector<1x8x128xf32>
    tpu.vector_store %arg4[%c0_16, %c0_17, %c0_18], %36 {strides = array<i32>} : memref<1x8x128xf32, #tpu.memory_space<vmem>>, vector<1x8x128xf32>,
    return
  }
  func.func @transform_0(%arg0: i32, %arg1: i32) -> (i32, i32) {
    %c1_i32 = arith.constant 1 : i32
    %0 = arith.muli %arg0, %c1_i32 : i32
    %1 = arith.addi %0, %arg1 : i32
    %c0_i32 = arith.constant 0 : i32
    %c0_i32_0 = arith.constant 0 : i32
    return %1, %c0_i32 : i32, i32
  }
  func.func @transform_1(%arg0: i32, %arg1: i32) -> (i32, i32) {
    %c1_i32 = arith.constant 1 : i32
    %0 = arith.muli %arg0, %c1_i32 : i32
    %1 = arith.addi %0, %arg1 : i32
    %c0_i32 = arith.constant 0 : i32
    %c0_i32_0 = arith.constant 0 : i32
    return %1, %c0_i32 : i32, i32
  }
  func.func @transform_2(%arg0: i32, %arg1: i32) -> (i32, i32, i32) {
    %c0_i32 = arith.constant 0 : i32
    %c0_i32_0 = arith.constant 0 : i32
    %c0_i32_1 = arith.constant 0 : i32
    return %arg0, %c0_i32, %c0_i32_0 : i32, i32, i32
  }
}

</mosaic_0001>

<bundles_post_ra>
// kernel: tpu_custom_call.1
= control target key start
LH: loop header
LB: loop body
LE: loop exit
PB: predicated region body
PF: predicated region fallthrough
CT: control target
= control target key end

     0   :  { %7 = vsyncpa [#allocation3], 0  ;;  %s269_s0 = inlined_call_operand.hbm [shape: f32[16,128], index: 0, kind: input, shape index: {}]   ;;  %s270_s1 = inlined_call_operand.hbm [shape: f32[16,128], index: 1, kind: input, shape index: {}]   ;;  %s271_s2 = inlined_call_operand.hbm [shape: f32[1,8,128], index: 2, kind: output, shape index: {}]  }
   0x1   :  { %8 = vsyncpa [#allocation6], 0 }
   0x2   :  { %9 = vsyncpa [#allocation4], 0  ;;  %s212_s9 = smov [#allocation2]   ;;  %s140_s13 = scalar_lea.hbm %s269_s0, 256 }
   0x3   :  { %s19_s10 = sshll.u32 %s212_s9, 4  ;;  %p141_p0 = scmp.ne.s32.totalorder %s269_s0, %s140_s13  ;;  %s20_s10 = int_to_ptr.vmem [resolvable:$true] %s19_s10 }
   0x4   :  { %p144_p1 = scmp.lt.u32.totalorder %s140_s13, %s269_s0 }
   0x6   :  { %p146_p2 = pnand %p144_p1, %p141_p0 }
   0x8   :  { %149 = shalt.err (!%p146_p2)
}
   0x9   :  { %s150_s18 = scalar_lea.vmem %s20_s10, 256  ;;  %p155_p4 = scmp.lt.s32.totalorder %s20_s10, %s20_s10 }
   0xa   :  { %p151_p3 = scmp.ne.s32.totalorder %s20_s10, %s150_s18  ;;  %p156_p5 = scmp.lt.s32.totalorder %s150_s18, %s150_s18 }
   0xc   :  { %p157_p6 = por %p156_p5, %p155_p4 }
   0xe   :  { %p158_p7 = pnand %p157_p6, %p151_p3 }
  0x10   :  { %161 = shalt.err (!%p158_p7)
}
  0x11   :  { %s213_s19 = smov 128   ;;  %s214_s20 = smov 8  }
  0x12   :  { %25 = dma.hbm_to_vmem [thread:$0]  %s269_s0, 256, %s20_s10, [#allocation3], %s213_s19, %s213_s19, %s214_s20  }
  0x13   :  { %s215_s23 = smov [#allocation5]   ;;  %s162_s27 = scalar_lea.hbm %s270_s1, 256 }
  0x14   :  { %s35_s24 = sshll.u32 %s215_s23, 4  ;;  %p163_p8 = scmp.ne.s32.totalorder %s270_s1, %s162_s27  ;;  %s36_s24 = int_to_ptr.vmem [resolvable:$true] %s35_s24 }
  0x15   :  { %p166_p9 = scmp.lt.u32.totalorder %s162_s27, %s270_s1 }
  0x17   :  { %p168_p10 = pnand %p166_p9, %p163_p8 }
  0x19   :  { %171 = shalt.err (!%p168_p10)
}
  0x1a   :  { %s172_s4 = scalar_lea.vmem %s36_s24, 256  ;;  %p177_p12 = scmp.lt.s32.totalorder %s36_s24, %s36_s24 }
  0x1b   :  { %p173_p11 = scmp.ne.s32.totalorder %s36_s24, %s172_s4  ;;  %p178_p13 = scmp.lt.s32.totalorder %s172_s4, %s172_s4 }
  0x1d   :  { %p179_p0 = por %p178_p13, %p177_p12 }
  0x1f   :  { %p180_p1 = pnand %p179_p0, %p173_p11 }
  0x21   :  { %183 = shalt.err (!%p180_p1)
}
  0x22   :  { %41 = dma.hbm_to_vmem [thread:$0]  %s270_s1, 256, %s36_s24, [#allocation6], %s213_s19, %s213_s19, %s214_s20  }
  0x23   :  { %206 = dma.done.wait [#allocation3], 256  }
  0x24   :  { %207 = vsyncadd [#allocation3], 4294967040 }
  0x25   :  { %208 = dma.done.wait [#allocation6], 256  }
  0x26   :  { %209 = vsyncadd [#allocation6], 4294967040  ;;  %v57_v0 = vld [vmem:[#allocation2] sm:$0xff]  ;;  %v58_v1 = vld [vmem:[#allocation2 + $0x8] sm:$0xff]  ;;  %v216_v23 = vmov 1.0   ;;  %s217_s1 = smov [#allocation7]  }
  0x27   :  { %v71_v2 = vand.u32 2147483647, %v57_v0  ;;  %v72_v3 = vand.u32 2147483647, %v58_v1  ;;  %v59_v12 = vld [vmem:[#allocation5] sm:$0xff]  ;;  %v60_v13 = vld [vmem:[#allocation5 + $0x8] sm:$0xff] }
  0x28   :  { %v65_v14 = vmax.f32 %v57_v0, 0.0  ;;  %v67_v15 = vmul.f32 %v59_v12, %v57_v0  ;;  %v66_v16 = vmax.f32 %v58_v1, 0.0  ;;  %v68_v17 = vmul.f32 %v60_v13, %v58_v1  ;;  %s111_s6 = sshll.u32 %s217_s1, 4  ;;  %s112_s6 = int_to_ptr.vmem [resolvable:$true] %s111_s6 }
  0x29   :  { %v73_v4 = vsub.f32 0.0, %v71_v2  ;;  %v74_v5 = vsub.f32 0.0, %v72_v3  ;;  %vm61_vm0 = vcmp.gt.f32.partialorder %v59_v12, 0.0  ;;  %vm62_vm1 = vcmp.gt.f32.partialorder %v60_v13, 0.0  ;;  %s184_s7 = scalar_lea.vmem %s112_s6, 128  ;;  %p189_p3 = scmp.lt.s32.totalorder %s112_s6, %s112_s6 }
  0x2a   :  { %v69_v18 = vsub.f32 %v65_v14, %v67_v15  ;;  %v70_v20 = vsub.f32 %v66_v16, %v68_v17  ;;  %v63_v24 = vsel %vm61_vm0, 2.0, %v216_v23  ;;  %v64_v26 = vsel %vm62_vm1, 2.0, %v216_v23  ;;  %p185_p2 = scmp.ne.s32.totalorder %s112_s6, %s184_s7  ;;  %p190_p4 = scmp.lt.s32.totalorder %s184_s7, %s184_s7 }
  0x2b   :  { %v75_v6 = vmul.f32 1.442695, %v73_v4  ;;  %v77_v7 = vmul.f32 1.442695, %v74_v5 }
  0x2c   :  { %p191_p5 = por %p190_p4, %p189_p3 }
  0x2d   :  { %128 = vpow2.f32 %v75_v6 }
  0x2e   :  { %130 = vpow2.f32 %v77_v7  ;;  %p192_p6 = pnand %p191_p5, %p185_p2 }
  0x37   :  { %v129_v8 = vpop.eup %128 }
  0x38   :  { %v131_v9 = vpop.eup %130  ;;  %v79_v10 = vadd.f32 1.0, %v129_v8 }
  0x39   :  { %v80_v11 = vadd.f32 1.0, %v131_v9 }
  0x3a   :  { %132 = vlog2.f32 %v79_v10 }
  0x3b   :  { %134 = vlog2.f32 %v80_v11 }
  0x44   :  { %v133_v19 = vpop.eup %132 }
  0x45   :  { %v135_v21 = vpop.eup %134  ;;  %v82_v22 = vmul.f32 0.6931472, %v133_v19 }
  0x46   :  { %v84_v25 = vmul.f32 0.6931472, %v135_v21 }
  0x47   :  { %v85_v27 = vadd.f32 %v82_v22, %v69_v18 }
  0x48   :  { %v86_v28 = vadd.f32 %v84_v25, %v70_v20 }
  0x49   :  { %v87_v29 = vmul.f32 %v85_v27, %v63_v24 }
  0x4a   :  { %v88_v30 = vmul.f32 %v86_v28, %v64_v26 }
  0x4b   :  { %v89_v31 = vsub.f32 0.0, %v87_v29 }
  0x4c   :  { %v90_v32 = vsub.f32 0.0, %v88_v30 }
  0x4d   :  { %v91_v33 = vmul.f32 1.442695, %v89_v31 }
  0x4e   :  { %v93_v34 = vmul.f32 1.442695, %v90_v32 }
  0x4f   :  { %136 = vpow2.f32 %v91_v33 }
  0x50   :  { %138 = vpow2.f32 %v93_v34 }
  0x59   :  { %v137_v35 = vpop.eup %136 }
  0x5a   :  { %v139_v36 = vpop.eup %138  ;;  %v95_v37 = vsub.f32 1.0, %v137_v35 }
  0x5b   :  { %v96_v38 = vsub.f32 1.0, %v139_v36 }
  0x5c   :  { %v97_v39 = vmul.f32 %v95_v37, %v95_v37 }
  0x5d   :  { %v98_v40 = vmul.f32 %v96_v38, %v96_v38 }
  0x5e   :  { %v99_v41 = vmul.f32 %v97_v39, %v87_v29 }
  0x5f   :  { %v100_v42 = vmul.f32 %v98_v40, %v88_v30 }
  0x61   :  { %v101_v43 = vadd.f32 %v100_v42, %v99_v41 }
  0x63   :  { %104 = vst [vmem:[#allocation7] sm:$0xff] %v101_v43 }
  0x64   :  { %195 = shalt.err (!%p192_p6)
}
  0x65   :  { %s196_s10 = scalar_lea.hbm %s271_s2, 128 }
  0x66   :  { %p197_p7 = scmp.ne.s32.totalorder %s271_s2, %s196_s10  ;;  %p200_p8 = scmp.lt.u32.totalorder %s196_s10, %s271_s2 }
  0x68   :  { %p202_p9 = pnand %p200_p8, %p197_p7 }
  0x6a   :  { %205 = shalt.err (!%p202_p9)
}
  0x6b   :  { %114 = dma.vmem_to_hbm [thread:$0]  %s112_s6, 128, %s271_s2, [#allocation4]  }
  0x6c   :  { %210 = dma.done.wait [#allocation4], 128  }
  0x6d   :  { %211 = vsyncadd [#allocation4], 4294967168 }
  0x6e   :  { %118 = vsyncpa [#allocation3], 1 }
  0x6f   :  { %119 = vsyncpa [#allocation6], 1 }
  0x70   :  { %120 = vsyncpa [#allocation4], 1 }

</bundles_post_ra>
